<compile_context>
chip_gen: v7x
topology: tpu7x:2x2x1
jax: 0.10.0
libtpu: 0.0.40
codegen_flags: <defaults>
</compile_context>

<pallas_src>
import functools
import random

import jax
import jax.numpy as jnp
from jax.experimental import pallas as pl
from jax.experimental.pallas import tpu as pltpu


# ----------------------------------------------------------------------------
# VMEM budgeting / tile selection (host-side, static per shape).
# ----------------------------------------------------------------------------

def _vmem_limits():
    """Returns (vmem_limit_bytes for CompilerParams, buffer budget for tiling)."""
    phys = 128 << 20
    try:
        phys = int(pltpu.get_tpu_info().vmem_capacity_bytes)
    except Exception:
        pass
    # ~57 MiB on v5e/v6e (128 MiB VMEM), ~28 MiB on v7x (64 MiB VMEM).
    vmem_limit = min(int(phys * 0.45), 100 << 20)
    buffer_budget = int(vmem_limit * 0.55)
    return vmem_limit, buffer_budget


def _divisor_tile(total, quantum, cap):
    """Largest t <= cap with (t == total) or (t % quantum == 0 and total % t == 0)."""
    if total <= cap:
        return total
    best = None
    t = quantum
    while t <= cap:
        if total % t == 0:
            best = t
        t += quantum
    return best


def _min_channel_tile(C):
    """Smallest legal channel tile: smallest multiple-of-8 divisor of C, else C."""
    t = 8
    while t < C:
        if C % t == 0:
            return t
        t += 8
    return C


def _choose_stats_tile(C, HW, itemsize, budget_bytes):
    """Channel tile for the stats pass (streams only x in; full HW per tile)."""
    per_elem = 2 * itemsize + 8          # double-buffered x + f32 temporaries
    cap_c = budget_bytes // max(per_elem * HW, 1)
    tc = _divisor_tile(C, 8, cap_c)
    return tc if tc is not None else _min_channel_tile(C)


def _choose_apply_tiles(C, HW, itemsize, budget_bytes):
    """(channel tile, spatial tile) for the apply pass (streams x in + out)."""
    per_elem = 4 * itemsize + 4          # 2 streams x 2 buffers + f32 scratch headroom
    cap_c = budget_bytes // max(per_elem * HW, 1)
    tc = _divisor_tile(C, 8, cap_c)
    if tc is not None:
        return tc, HW                    # full spatial extent, tile channels
    tc = _min_channel_tile(C)
    cap_hw = budget_bytes // max(per_elem * tc, 1)
    thw = _divisor_tile(HW, 128, cap_hw)
    if thw is not None:
        return tc, thw                   # tile the spatial axis too
    # Last resort: smallest legal tile (explicit vmem_limit still bounds the call).
    return tc, (128 if HW % 128 == 0 else HW)


# ----------------------------------------------------------------------------
# Kernels
# ----------------------------------------------------------------------------

def _stats_kernel(x_ref, mu_ref, sig_ref, *, eps):
    # x_ref: (1, TCS, HW) tile of one sample's channel slab.
    x = x_ref[...].astype(jnp.float32)
    n = x.shape[-1]
    # Two-pass reduction inside the resident tile: numerically safe and only
    # adds VPU work to a memory-bound kernel (no extra HBM traffic).
    mu = jnp.sum(x, axis=-1, keepdims=True) * (1.0 / n)             # (1, TCS, 1)
    d = x - mu
    denom = float(n - 1) if n > 1 else 1.0                          # torch.var: unbiased
    var = jnp.sum(d * d, axis=-1, keepdims=True) * (1.0 / denom)
    mu_ref[...] = mu
    sig_ref[...] = jnp.sqrt(var + eps)


def _apply_kernel(x_ref, coef_ref, o_ref):
    # x_ref: (1, TC, THW) tile; coef_ref: (2, 1, TC, 1) f32 = stacked (a, bias).
    a = coef_ref[0]                      # (1, TC, 1)
    b = coef_ref[1]                      # (1, TC, 1)
    x = x_ref[...].astype(jnp.float32)   # affine in f32, cast only at the store
    o_ref[...] = (x * a + b).astype(o_ref.dtype)


# ----------------------------------------------------------------------------
# Wrapper
# ----------------------------------------------------------------------------

@functools.partial(jax.jit, static_argnames=("eps",))
def mixstyle_apply(x, perm, lmda, *, eps=1e-6):
    """Apply MixStyle mixing given permutation indices and per-sample lambdas.

    x    : (B, C, H, W) float array (NCHW)
    perm : (B,) int32 permutation of [0, B)
    lmda : (B,) float Beta(alpha, alpha) samples
    """
    B, C, H, W = x.shape
    HW = H * W
    xr = x.reshape(B, C, HW)
    itemsize = x.dtype.itemsize
    vmem_limit, budget = _vmem_limits()

    # ---- Pass 1: per-(sample, channel) mu / sig -----------------------------
    tcs = _choose_stats_tile(C, HW, itemsize, budget)
    if (2 * itemsize + 8) * tcs * HW > vmem_limit:
        # Even the smallest legal channel slab cannot fit the scoped VMEM
        # budget (huge HW, awkward C): fall back to plain-JAX stats.
        xf = xr.astype(jnp.float32)
        mu = jnp.mean(xf, axis=-1)
        var = jnp.var(xf, axis=-1, ddof=1 if HW > 1 else 0)
        sig = jnp.sqrt(var + eps)
    else:
        mu3, sig3 = pl.pallas_call(
            functools.partial(_stats_kernel, eps=eps),
            out_shape=(jax.ShapeDtypeStruct((B, C, 1), jnp.float32),
                       jax.ShapeDtypeStruct((B, C, 1), jnp.float32)),
            grid_spec=pltpu.PrefetchScalarGridSpec(
                num_scalar_prefetch=0,
                grid=(B, C // tcs),
                in_specs=[pl.BlockSpec((1, tcs, HW), lambda b, c: (b, c, 0))],
                out_specs=(pl.BlockSpec((1, tcs, 1), lambda b, c: (b, c, 0)),
                           pl.BlockSpec((1, tcs, 1), lambda b, c: (b, c, 0))),
            ),
            compiler_params=pltpu.CompilerParams(
                dimension_semantics=("parallel", "parallel"),
                vmem_limit_bytes=vmem_limit),
        )(xr)
        mu, sig = mu3[..., 0], sig3[..., 0]            # (B, C) f32

    # ---- Mix step on tiny (B, C) stats in plain JAX, folded to an affine ----
    lm = lmda.reshape(B, 1).astype(jnp.float32)
    mu2, sig2 = mu[perm], sig[perm]
    mu_mix = mu * lm + mu2 * (1.0 - lm)
    sig_mix = sig * lm + sig2 * (1.0 - lm)
    a = sig_mix / sig                                  # o = (x - mu)/sig * sig_mix + mu_mix
    bias = mu_mix - mu * a                             #   =  x * a + bias
    coef = jnp.stack([a, bias], axis=0)[..., None]     # (2, B, C, 1) f32

    # ---- Pass 2: stream x exactly once, per-channel affine ------------------
    tc, thw = _choose_apply_tiles(C, HW, itemsize, budget)
    out = pl.pallas_call(
        _apply_kernel,
        out_shape=jax.ShapeDtypeStruct((B, C, HW), x.dtype),
        grid_spec=pltpu.PrefetchScalarGridSpec(
            num_scalar_prefetch=0,
            grid=(B, C // tc, HW // thw),
            in_specs=[
                pl.BlockSpec((1, tc, thw), lambda b, c, s: (b, c, s)),
                pl.BlockSpec((2, 1, tc, 1), lambda b, c, s: (0, b, c, 0)),
            ],
            out_specs=pl.BlockSpec((1, tc, thw), lambda b, c, s: (b, c, s)),
        ),
        compiler_params=pltpu.CompilerParams(
            dimension_semantics=("parallel", "parallel", "parallel"),
            vmem_limit_bytes=vmem_limit),
    )(xr, coef)

    return out.reshape(B, C, H, W)


def mixstyle_forward(x, key, *, p=0.5, alpha=0.1, eps=1e-6, mix="random",
                     training=True, activated=True, coin=None):
    """Full MixStyle forward: RNG glue host-side / plain JAX, hot path in Pallas."""
    if not training or not activated:
        return x

    # Host-side probabilistic gate (mirrors PyTorch's `random.random() > p`);
    # kept off the device so the mixing branch has no blocking sync.
    if coin is None:
        coin = random.random()
    if coin > p:
        return x

    B = x.shape[0]
    k_beta, k_perm = jax.random.split(key)
    lmda = jax.random.beta(k_beta, alpha, alpha, shape=(B,)).astype(jnp.float32)

    if mix == "random":
        perm = jax.random.permutation(k_perm, B).astype(jnp.int32)
    elif mix == "crossdomain":
        kb, ka = jax.random.split(k_perm)
        perm = jnp.arange(B - 1, -1, -1)
        half = B // 2
        perm_b, perm_a = perm[:half], perm[half:]
        perm_b = perm_b[jax.random.permutation(kb, perm_b.shape[0])]
        perm_a = perm_a[jax.random.permutation(ka, perm_a.shape[0])]
        perm = jnp.concatenate([perm_b, perm_a], axis=0).astype(jnp.int32)
    else:
        raise NotImplementedError

    return mixstyle_apply(x, perm, lmda, eps=eps)


def _reference(x, perm, lmda, eps=1e-6):
    """Pure-JAX reference matching the PyTorch semantics, for verification."""
    mu = jnp.mean(x, axis=(2, 3), keepdims=True)
    var = jnp.var(x, axis=(2, 3), keepdims=True, ddof=1)
    sig = jnp.sqrt(var + eps)
    x_normed = (x - mu) / sig
    lm = lmda.reshape(-1, 1, 1, 1)
    mu2, sig2 = mu[perm], sig[perm]
    mu_mix = mu * lm + mu2 * (1.0 - lm)
    sig_mix = sig * lm + sig2 * (1.0 - lm)
    return x_normed * sig_mix + mu_mix


if __name__ == "__main__":
    key = jax.random.PRNGKey(0)
    kx, kfwd = jax.random.split(key)

    B, C, H, W = 2, 4, 16, 16
    x = jax.random.normal(kx, (B, C, H, W), dtype=jnp.float32)

    # Force the mixing path (p=1.0) so the Pallas kernels always run.
    out = mixstyle_forward(x, kfwd, p=1.0, alpha=0.1, eps=1e-6, mix="random",
                           training=True, activated=True)
    out = jax.block_until_ready(out)
    assert out.shape == x.shape and out.dtype == x.dtype

    # Cross-check the kernel path against the pure-JAX reference with fixed
    # perm / lambda (the randomness lives outside the kernels).
    kb, kp = jax.random.split(kfwd)
    perm = jax.random.permutation(kp, B).astype(jnp.int32)
    lmda = jax.random.beta(kb, 0.1, 0.1, shape=(B,)).astype(jnp.float32)
    got = jax.block_until_ready(mixstyle_apply(x, perm, lmda))
    want = _reference(x, perm, lmda)
    assert jnp.allclose(got, want, atol=1e-4, rtol=1e-4), "mismatch vs reference"

    # Second shape: non-128-multiple spatial extent (masked-lane store path).
    x2 = jax.random.normal(jax.random.PRNGKey(1), (2, 8, 7, 7), dtype=jnp.float32)
    perm2 = jnp.array([1, 0], dtype=jnp.int32)
    lmda2 = jnp.array([0.25, 0.9], dtype=jnp.float32)
    got2 = jax.block_until_ready(mixstyle_apply(x2, perm2, lmda2))
    want2 = _reference(x2, perm2, lmda2)
    assert jnp.allclose(got2, want2, atol=1e-4, rtol=1e-4), "mismatch vs reference (7x7)"

    print("KERNEL_OK")
</pallas_src>

<mosaic_0001>
module attributes {stable_mosaic.version = 11 : i64} {
  func.func @_stats_kernel(%arg0: i32, %arg1: i32, %arg2: memref<1x4x256xf32, #tpu.memory_space<vmem>>, %arg3: memref<1x4x1xf32, #tpu.memory_space<vmem>>, %arg4: memref<1x4x1xf32, #tpu.memory_space<vmem>>) attributes {dimension_semantics = [#tpu.dimension_semantics<parallel>, #tpu.dimension_semantics<parallel>], iteration_bounds = array<i64: 2, 1>, scalar_prefetch = 0 : i64, scratch_operands = 0 : i64, tpu.core_type = #tpu.core_type<tc>, window_params = [{transform_indices = @transform_0, window_bounds = array<i64: 1, 4, 256>}, {transform_indices = @transform_1, window_bounds = array<i64: 1, 4, 1>}, {transform_indices = @transform_2, window_bounds = array<i64: 1, 4, 1>}]} {
    %c0 = arith.constant 0 : index
    %c0_0 = arith.constant 0 : index
    %c0_1 = arith.constant 0 : index
    %0 = vector.load %arg2[%c0, %c0_0, %c0_1] : memref<1x4x256xf32, #tpu.memory_space<vmem>>, vector<1x4x256xf32>
    %cst = arith.constant dense<0.000000e+00> : vector<1x4xf32>
    %1 = vector.multi_reduction <add>, %0, %cst [2] : vector<1x4x256xf32> to vector<1x4xf32>
    %2 = vector.shape_cast %1 : vector<1x4xf32> to vector<1x4x1xf32>
    %cst_2 = arith.constant 3.906250e-03 : f32
    %3 = vector.broadcast %cst_2 : f32 to vector<1x4x1xf32>
    %4 = arith.mulf %2, %3 : vector<1x4x1xf32>
    %5 = vector.broadcast %4 : vector<1x4x1xf32> to vector<1x4x256xf32>
    %6 = arith.subf %0, %5 : vector<1x4x256xf32>
    %7 = arith.mulf %6, %6 : vector<1x4x256xf32>
    %cst_3 = arith.constant dense<0.000000e+00> : vector<1x4xf32>
    %8 = vector.multi_reduction <add>, %7, %cst_3 [2] : vector<1x4x256xf32> to vector<1x4xf32>
    %9 = vector.shape_cast %8 : vector<1x4xf32> to vector<1x4x1xf32>
    %cst_4 = arith.constant 0.00392156886 : f32
    %10 = vector.broadcast %cst_4 : f32 to vector<1x4x1xf32>
    %11 = arith.mulf %9, %10 : vector<1x4x1xf32>
    %c0_5 = arith.constant 0 : index
    %c0_6 = arith.constant 0 : index
    %c0_7 = arith.constant 0 : index
    %12 = vector.load %arg3[%c0_5, %c0_6, %c0_7] : memref<1x4x1xf32, #tpu.memory_space<vmem>>, vector<1x4x1xf32>
    tpu.vector_store %arg3[%c0_5, %c0_6, %c0_7], %4 {strides = array<i32>} : memref<1x4x1xf32, #tpu.memory_space<vmem>>, vector<1x4x1xf32>,
    %cst_8 = arith.constant 9.99999997E-7 : f32
    %13 = vector.broadcast %cst_8 : f32 to vector<1x4x1xf32>
    %14 = arith.addf %11, %13 : vector<1x4x1xf32>
    %15 = math.sqrt %14 : vector<1x4x1xf32>
    %c0_9 = arith.constant 0 : index
    %c0_10 = arith.constant 0 : index
    %c0_11 = arith.constant 0 : index
    %16 = vector.load %arg4[%c0_9, %c0_10, %c0_11] : memref<1x4x1xf32, #tpu.memory_space<vmem>>, vector<1x4x1xf32>
    tpu.vector_store %arg4[%c0_9, %c0_10, %c0_11], %15 {strides = array<i32>} : memref<1x4x1xf32, #tpu.memory_space<vmem>>, vector<1x4x1xf32>,
    return
  }
  func.func @transform_0(%arg0: i32, %arg1: i32) -> (i32, i32, i32) {
    %c0_i32 = arith.constant 0 : i32
    %c0_i32_0 = arith.constant 0 : i32
    return %arg0, %arg1, %c0_i32 : i32, i32, i32
  }
  func.func @transform_1(%arg0: i32, %arg1: i32) -> (i32, i32, i32) {
    %c0_i32 = arith.constant 0 : i32
    %c0_i32_0 = arith.constant 0 : i32
    return %arg0, %arg1, %c0_i32 : i32, i32, i32
  }
  func.func @transform_2(%arg0: i32, %arg1: i32) -> (i32, i32, i32) {
    %c0_i32 = arith.constant 0 : i32
    %c0_i32_0 = arith.constant 0 : i32
    return %arg0, %arg1, %c0_i32 : i32, i32, i32
  }
}

module attributes {stable_mosaic.version = 11 : i64} {
  func.func @_apply_kernel(%arg0: i32, %arg1: i32, %arg2: i32, %arg3: memref<1x4x256xf32, #tpu.memory_space<vmem>>, %arg4: memref<2x1x4x1xf32, #tpu.memory_space<vmem>>, %arg5: memref<1x4x256xf32, #tpu.memory_space<vmem>>) attributes {dimension_semantics = [#tpu.dimension_semantics<parallel>, #tpu.dimension_semantics<parallel>, #tpu.dimension_semantics<parallel>], iteration_bounds = array<i64: 2, 1, 1>, scalar_prefetch = 0 : i64, scratch_operands = 0 : i64, tpu.core_type = #tpu.core_type<tc>, window_params = [{transform_indices = @transform_0, window_bounds = array<i64: 1, 4, 256>}, {transform_indices = @transform_1, window_bounds = array<i64: 2, 1, 4, 1>}, {transform_indices = @transform_2, window_bounds = array<i64: 1, 4, 256>}]} {
    %c0 = arith.constant 0 : index
    %c0_0 = arith.constant 0 : index
    %c0_1 = arith.constant 0 : index
    %c0_2 = arith.constant 0 : index
    %0 = vector.load %arg4[%c0, %c0_0, %c0_1, %c0_2] : memref<2x1x4x1xf32, #tpu.memory_space<vmem>>, vector<1x1x4x1xf32>
    %1 = vector.shape_cast %0 : vector<1x1x4x1xf32> to vector<1x4x1xf32>
    %c1 = arith.constant 1 : index
    %c0_3 = arith.constant 0 : index
    %c0_4 = arith.constant 0 : index
    %c0_5 = arith.constant 0 : index
    %2 = vector.load %arg4[%c1, %c0_3, %c0_4, %c0_5] : memref<2x1x4x1xf32, #tpu.memory_space<vmem>>, vector<1x1x4x1xf32>
    %3 = vector.shape_cast %2 : vector<1x1x4x1xf32> to vector<1x4x1xf32>
    %c0_6 = arith.constant 0 : index
    %c0_7 = arith.constant 0 : index
    %c0_8 = arith.constant 0 : index
    %4 = vector.load %arg3[%c0_6, %c0_7, %c0_8] : memref<1x4x256xf32, #tpu.memory_space<vmem>>, vector<1x4x256xf32>
    %5 = vector.broadcast %1 : vector<1x4x1xf32> to vector<1x4x256xf32>
    %6 = arith.mulf %4, %5 : vector<1x4x256xf32>
    %7 = vector.broadcast %3 : vector<1x4x1xf32> to vector<1x4x256xf32>
    %8 = arith.addf %6, %7 : vector<1x4x256xf32>
    %c0_9 = arith.constant 0 : index
    %c0_10 = arith.constant 0 : index
    %c0_11 = arith.constant 0 : index
    %9 = vector.load %arg5[%c0_9, %c0_10, %c0_11] : memref<1x4x256xf32, #tpu.memory_space<vmem>>, vector<1x4x256xf32>
    tpu.vector_store %arg5[%c0_9, %c0_10, %c0_11], %8 {strides = array<i32>} : memref<1x4x256xf32, #tpu.memory_space<vmem>>, vector<1x4x256xf32>,
    return
  }
  func.func @transform_0(%arg0: i32, %arg1: i32, %arg2: i32) -> (i32, i32, i32) {
    %c0_i32 = arith.constant 0 : i32
    return %arg0, %arg1, %arg2 : i32, i32, i32
  }
  func.func @transform_1(%arg0: i32, %arg1: i32, %arg2: i32) -> (i32, i32, i32, i32) {
    %c0_i32 = arith.constant 0 : i32
    %c0_i32_0 = arith.constant 0 : i32
    %c0_i32_1 = arith.constant 0 : i32
    return %c0_i32, %arg0, %arg1, %c0_i32_0 : i32, i32, i32, i32
  }
  func.func @transform_2(%arg0: i32, %arg1: i32, %arg2: i32) -> (i32, i32, i32) {
    %c0_i32 = arith.constant 0 : i32
    return %arg0, %arg1, %arg2 : i32, i32, i32
  }
}

</mosaic_0001>

<bundles_post_ra>
// kernel: mixstyle_apply.2
= control target key start
LH: loop header
LB: loop body
LE: loop exit
PB: predicated region body
PF: predicated region fallthrough
CT: control target
= control target key end

     0   :  { %s438_s9 = smov 0   ;;  %s440_s10 = smov 0   ;;  %s484_s0 = inlined_call_operand.vmem [shape: f32[2,4,256], index: 0, kind: input, shape index: {}]   ;;  %s485_s1 = inlined_call_operand.vmem [shape: f32[2,4,1], index: 1, kind: output, shape index: {0}]   ;;  %s486_s2 = inlined_call_operand.vmem [shape: f32[2,4,1], index: 2, kind: output, shape index: {1}]  }
   0x1   :  { %s442_s11 = smov 0  }
   0x2 LB: > { %s25_s12 = sadd.s32 1, %s416_s10  ;;  %p362_p0 = scmp.ge.s32.totalorder %s420_s11, 1  ;;  %s420_s11 = sphi %s442_s11, %s13_s11   ;;  %s416_s10 = sphi %s440_s10, %s488_s10   ;;  %s412_s9 = sphi %s438_s9, %s487_s9  }
   0x3   : > { %p27_p1 = scmp.ge.s32.totalorder %s25_s12, 2  ;;  %p137_p2 = scmp.lt.s32.totalorder %s420_s11, 3 }
   0x5   : > { %s490_s12 = smov (%p27_p1, %s25_s12), 0  ;;  %p138_p3 = pnand %p362_p0, %p137_p2 }
   0x6   : > { %p172_p4 = scmp.lt.s32.totalorder (!%p138_p3), %s412_s9, 1  ;;  %vm199_vm0 = vcmask (!%p138_p3), 1043456   ;;  %v422_v5 = vmov (!%p138_p3), 839922192   ;;  %v210_v7 = vlaneseq (!%p138_p3)  ;;  %vm226_vm1 = vcmask (!%p138_p3), 3072  }
   0x7   : > { %141 = sbr.rel (%p138_p3) target bundleno = 340 (0x154), region = 24  ;;  %v208_v6 = vunpack.c.l.s4 (!%p138_p3), %v422_v5 }
   0x8   : > { %v211_v9 = vshrl.u32 (!%p138_p3), %v210_v7, 7 }
   0x9   : > { %v209_v8 = vunpack.c.0.s8 (!%p138_p3), %v208_v6 }
   0xb   : > { %v212_v10 = vsub.s32 (!%p138_p3), %v209_v8, %v211_v9 }
   0xe   : > { %s492_s9 = smov (!%p172_p4, %s412_s9), 1 }
   0xf   : > { %s369_s13 = sshll.u32 %s492_s9, 3  ;;  %s365_s17 = sshll.u32 %s492_s9, 2 }
  0x10   : > { %s180_s16 = scalar_lea.vmem %s484_s0, %s369_s13  ;;  %s187_s20 = scalar_lea.vmem %s485_s1, %s365_s17 }
  0x11   : > { %v195_v0 = vld [vmem:[%s180_s16] sm:$0xff]  ;;  %s194_s23 = scalar_lea.vmem %s486_s2, %s365_s17 }
  0x12   : > { %v197_v1 = vcombine.high %v195_v0, %v195_v0  ;;  %v200_v2 = vsel %vm199_vm0, %v195_v0, 0.0 }
  0x14   : > { %v201_v3 = vsel %vm199_vm0, %v197_v1, 0.0 }
  0x15   : > { %v202_v4 = vadd.f32 %v201_v3, %v200_v2 }
  0x17   : > { %203 = vadd.xlane.f32.xlu0 %v202_v4 }
  0xa4   : > { %v204_v11 = vpop.xlane.xlu0 %203 }
  0xa5   : > { %v205_v12 = vmul.f32 0.00390625, %v204_v11 }
  0xa7   : > { %v213_v13 = vrot.slane %v205_v12, %v212_v10  ;;  %227 = vst.msk [vmem:[%s187_s20] sm:$0xf] %vm226_vm1, %v205_v12 }
  0xa9   : > { %v215_v14 = vsub.f32 %v195_v0, %v213_v13 }
  0xab   : > { %v216_v15 = vmul.f32 %v215_v14, %v215_v14 }
  0xad   : > { %v218_v16 = vcombine.high %v216_v15, %v216_v15  ;;  %v220_v17 = vsel %vm199_vm0, %v216_v15, 0.0 }
  0xaf   : > { %v221_v18 = vsel %vm199_vm0, %v218_v16, 0.0 }
  0xb0   : > { %v222_v19 = vadd.f32 %v221_v18, %v220_v17 }
  0xb2   : > { %223 = vadd.xlane.f32.xlu0 %v222_v19 }
 0x13f   : > { %v224_v20 = vpop.xlane.xlu0 %223 }
 0x140   : > { %v225_v21 = vmul.f32 0.003921569, %v224_v20 }
 0x142   : > { %v228_v22 = vadd.f32 1e-06, %v225_v21 }
 0x144   : > { %396 = vrsqrt.f32 %v228_v22  ;;  %vm231_vm2 = vcmp.eq.f32.partialorder %v228_v22, inf  ;;  %v234_v25 = vand.u32 2147483648, %v228_v22  ;;  %vm233_vm3 = vcmp.eq.f32.partialorder %v228_v22, 0.0 }
 0x14e   : > { %v397_v23 = vpop.eup %396 }
 0x14f   : > { %v230_v24 = vmul.f32 %v397_v23, %v228_v22 }
 0x151   : > { %v232_v26 = vsel %vm231_vm2, %v228_v22, %v230_v24 }
 0x152   : > { %v235_v27 = vsel %vm233_vm3, %v234_v25, %v232_v26 }
 0x153   : > { %236 = vst.msk [vmem:[%s194_s23] sm:$0xf] %vm226_vm1, %v235_v27 }
 0x154 PF: > { %s13_s11 = sadd.s32 1, %s420_s11   ;;  %s487_s9 = smov %s416_s10 }
 0x155   : > { %p10_p5 = scmp.ge.s32.totalorder %s13_s11, 4   ;;  %s488_s10 = smov %s490_s12 }
 0x157   :  { %12 = sbr.rel (!%p10_p5) target bundleno = 2 (0x2), region = 66 }

// kernel: mixstyle_apply.3
= control target key start
LH: loop header
LB: loop body
LE: loop exit
PB: predicated region body
PF: predicated region fallthrough
CT: control target
= control target key end

     0   :  { %s561_s9 = smov 0   ;;  %s563_s10 = smov 0   ;;  %s630_s0 = inlined_call_operand.vmem [shape: f32[2,4,256], index: 0, kind: input, shape index: {}]   ;;  %s631_s1 = inlined_call_operand.vmem [shape: f32[2,2,4,1], index: 1, kind: input, shape index: {}]   ;;  %s632_s2 = inlined_call_operand.vmem [shape: f32[2,4,256], index: 2, kind: output, shape index: {}]  }
   0x1   :  { %s565_s11 = smov 0   ;;  %s567_s12 = smov 0  }
   0x2   :  { %s569_s13 = smov 0  }
   0x3 LB: > { %s31_s14 = sadd.s32 1, %s538_s12  ;;  %p77_p1 = scmp.ne.s32.totalorder %s530_s10, %s526_s9  ;;  %s542_s13 = sphi %s569_s13, %s12_s13   ;;  %s538_s12 = sphi %s567_s12, %s636_s12   ;;  %s534_s11 = sphi %s565_s11, %s635_s11   ;;  %s530_s10 = sphi %s563_s10, %s634_s10   ;;  %s526_s9 = sphi %s561_s9, %s633_s9  }
   0x4   : > { %p33_p0 = scmp.ge.s32.totalorder %s31_s14, 2  ;;  %p78_p2 = scmp.eq.s32.totalorder %s542_s13, 0 }
   0x5   : > { %s70_s16 = sadd.s32 1, %s530_s10  ;;  %p447_p5 = scmp.ge.s32.totalorder %s542_s13, 2 }
   0x6   : > { %s638_s14 = smov (%p33_p0, %s31_s14), 0  ;;  %p79_p3 = por %p78_p2, %p77_p1 }
   0x7   : > { %s65_s15 = ssub.s32 %s538_s12, %s638_s14  ;;  %133 = sbr.rel (%p447_p5) target bundleno = 21 (0x15), region = 16 }
   0x8   : > { %p68_p4 = scmp.eq.s32.totalorder %s65_s15, 0 }
   0xa   : > { %s596_s17 = scalar_select %p68_p4, %s530_s10, %s70_s16  }
   0xe   : > { %153 = sbr.rel (!%p79_p3) target bundleno = 21 (0x15), region = 24  ;;  %s155_s18 = sand.u32 (%p79_p3), 1, %s530_s10  }
   0xf   : > { %s449_s19 = sshll.u32 (%p79_p3), %s538_s12, 2  ;;  %s448_s20 = sshll.u32 (%p79_p3), %s155_s18, 3 }
  0x10   : > { %s160_s23 = scalar_lea.vmem (%p79_p3), %s631_s1, %s449_s19  ;;  %s157_s24 = scalar_lea.vmem (%p79_p3), [#allocation2], %s448_s20 }
  0x11   : > { %v176_v0 = vld [vmem:[%s160_s23] sm:$0xf] (%p79_p3)  ;;  %v178_v1 = vld [vmem:[%s160_s23 + $0x8] sm:$0xf] (%p79_p3) }
  0x12   : > { %177 = vst [vmem:[%s157_s24] sm:$0xf] (%p79_p3), %v176_v0  ;;  %179 = vst [vmem:[%s157_s24 + $0x4] sm:$0xf] (%p79_p3), %v178_v1 }
  0x15 PF: > { %p450_p6 = scmp.ge.s32.totalorder %s542_s13, 1  ;;  %p205_p7 = scmp.lt.s32.totalorder %s542_s13, 3 }
  0x17   : > { %p206_p8 = pnand %p450_p6, %p205_p7 }
  0x18   : > { %s212_s25 = sand.u32 (!%p206_p8), 1, %s526_s9   ;;  %v544_v2 = vmov (!%p206_p8), 0   ;;  %p255_p9 = scmp.lt.s32.totalorder (!%p206_p8), %s534_s11, 1  ;;  %v545_v5 = vmov (!%p206_p8), 839922192   ;;  %v293_v7 = vlaneseq (!%p206_p8) }
  0x19   : > { %209 = sbr.rel (%p206_p8) target bundleno = 165 (0xa5), region = 65  ;;  %503 = vset.pattern.permute.xlu0 (!%p206_p8), %v544_v2  ;;  %s451_s26 = sshll.u32 (!%p206_p8), %s212_s25, 3  ;;  %v291_v6 = vunpack.c.l.s4 (!%p206_p8), %v545_v5 }
  0x1a   : > { %s214_s27 = scalar_lea.vmem (!%p206_p8), [#allocation2], %s451_s26  ;;  %v294_v9 = vshrl.u32 (!%p206_p8), %v293_v7, 7 }
  0x1b   : > { %v282_v3 = vld [vmem:[%s214_s27] sm:$0xf] (!%p206_p8)  ;;  %v456_v4 = vld [vmem:[%s214_s27 + $0x4] sm:$0xf] (!%p206_p8)  ;;  %v292_v8 = vunpack.c.0.s8 (!%p206_p8), %v291_v6 }
  0x1c   : > { %288 = vperm.xlu0 (!%p206_p8), %503, %v282_v3  }
  0x1d   : > { %v295_v10 = vsub.s32 (!%p206_p8), %v292_v8, %v294_v9 }
  0x20   : > { %301 = vperm.xlu0 %503, %v456_v4   ;;  %s640_s11 = smov (!%p255_p9, %s534_s11), 1 }
  0x21   : > { %s459_s28 = sshll.u32 %s640_s11, 3 }
  0x22   : > { %s266_s3 = scalar_lea.vmem %s630_s0, %s459_s28  ;;  %s280_s6 = scalar_lea.vmem %s632_s2, %s459_s28 }
  0x23   : > { %v285_v13 = vld [vmem:[%s266_s3] sm:$0xff] }
  0x9b   : > { %v289_v11 = vpop.permute.xlu0 %288 }
  0x9c   : > { %v296_v12 = vrot.slane %v289_v11, %v295_v10 }
  0x9e   : > { %v298_v15 = vmul.f32 %v296_v12, %v285_v13 }
  0x9f   : > { %v302_v14 = vpop.permute.xlu0 %301 }
  0xa0   : > { %v309_v16 = vrot.slane %v302_v14, %v295_v10 }
  0xa2   : > { %v311_v17 = vadd.f32 %v309_v16, %v298_v15 }
  0xa4   : > { %312 = vst [vmem:[%s280_s6] sm:$0xff] %v311_v17 }
  0xa5 PF: > { %s12_s13 = sadd.s32 1, %s542_s13   ;;  %s633_s9 = smov %s530_s10 }
  0xa6   : > { %p9_p10 = scmp.ge.s32.totalorder %s12_s13, 4   ;;  %s634_s10 = smov %s596_s17 }
  0xa7   : > { %s635_s11 = smov %s538_s12  ;;  %s636_s12 = smov %s638_s14 }
  0xa8   :  { %11 = sbr.rel (!%p9_p10) target bundleno = 3 (0x3), region = 108 }

</bundles_post_ra>
